<compile_context>
chip_gen: v5e
topology: v5e:2x2
jax: 0.10.0
libtpu: 0.0.40
codegen_flags: <defaults>
</compile_context>

<pallas_src>
import functools

import jax
import jax.numpy as jnp
from jax.experimental import pallas as pl
from jax.experimental.pallas import tpu as pltpu


def _matmult_kernel(*refs, n_apply, has_bias, compute_dtype):
    """One M-tile of the repeated-Linear + partial-sum kernel.

    refs = (x_ref, w_ref[, b_ref], o_ref)
      x_ref: (TM, N) VMEM input rows (already in the MXU input dtype)
      w_ref: (N, N)  VMEM weight, already transposed (out = x @ w_ref)
      b_ref: (1, N)  VMEM f32 bias row (present only when has_bias)
      o_ref: (1, 1)  SMEM partial sum of this tile's final activation
    """
    if has_bias:
        x_ref, w_ref, b_ref, o_ref = refs
    else:
        x_ref, w_ref, o_ref = refs
        b_ref = None

    # Weight is stored MXU-native and in the MXU input dtype; no in-kernel
    # transpose or cast is needed.
    w = w_ref[...]
    if w.dtype != compute_dtype:
        w = w.astype(compute_dtype)

    if has_bias:
        # Keep the bias as a (1, N) f32 row: the broadcast add uses a
        # replicated-sublane layout, so no (tm, N) f32 copy stays live
        # across the whole unrolled chain.
        b_row = b_ref[...].astype(jnp.float32)

    cur = x_ref[...]
    if cur.dtype != compute_dtype:
        cur = cur.astype(compute_dtype)

    acc = None
    # Static Python unroll: n_apply is a compile-time int, so the LLO scheduler
    # sees the whole chain and can overlap MXU drain with the bias add / recast.
    for step in range(n_apply):
        acc = jnp.dot(cur, w, preferred_element_type=jnp.float32)
        if has_bias:
            acc = acc + b_row
        if step + 1 < n_apply:
            cur = acc.astype(compute_dtype)

    o_ref[0, 0] = jnp.sum(acc)


def _vmem_budget_bytes():
    """~85% of this generation's per-core VMEM (v7x: 64 MiB, v5e/v6e: 128 MiB)."""
    try:
        cap = int(pltpu.get_tpu_info().vmem_capacity_bytes)
    except Exception:  # conservative fallback if the query is unavailable
        cap = 64 * 1024 * 1024
    return int(cap * 0.85)


def _choose_tm(m, n, x_itemsize, w_bytes, vmem_budget):
    """Pick the M-tile size.

    Largest tile that (a) divides M, (b) fits the per-row VMEM left after the
    single-buffered resident weight, and (c) prefers an even block count so the
    "parallel" M axis actually splits across v7x's two TensorCores.
    """
    if m % 8 != 0:
        return m  # single full-extent block
    # Per activation row: double-buffered input + f32 accumulator + recast
    # copy + matmul output (conservative estimate).
    per_row = n * (2 * x_itemsize + 12)
    avail = vmem_budget - w_bytes - 4 * n - (1 << 20)
    tm_cap = max(8, avail // per_row)
    cands = [c for c in (2048, 1024, 512, 256, 128, 64, 32, 16, 8)
             if m % c == 0 and c <= tm_cap]
    if not cands:
        return 8
    for c in cands:
        if (m // c) % 2 == 0:   # even block count -> both TCs busy on v7x
            return c
    return cands[0]


def matmult_forward(x, weight, bias, *, loop_count, is_add_bias,
                    compute_dtype=jnp.bfloat16, collapse_chain=False):
    """JAX/Pallas equivalent of Matmult(n, is_add_bias, loop_count)(x).

    x:      (M, N) float32
    weight: (N, N) float32, PyTorch Linear convention (out = x @ weight.T + bias)
    bias:   (N,)   float32 or None
    Returns a scalar float32: mean of the final activation.
    """
    M, N = x.shape
    assert weight.shape == (N, N)
    # torch forward applies the Linear once, then loop_count - 1 more times.
    n_apply = max(1, int(loop_count))
    has_bias = bool(is_add_bias) and bias is not None

    # One-time host-side transpose so the kernel feeds the MXU natively.
    w_t = jnp.transpose(weight).astype(jnp.float32)
    b_f32 = bias.astype(jnp.float32) if has_bias else None

    if collapse_chain and n_apply > 1:
        # out = x @ W_t^n + b @ (W_t^{n-1} + ... + I): n_apply x FLOP reduction
        # in-kernel for (n_apply - 1) small f32 (N, N) matmuls in the wrapper.
        w_eff = w_t
        b_eff = b_f32
        for _ in range(n_apply - 1):
            if has_bias:
                b_eff = b_eff @ w_t + b_f32
            w_eff = w_eff @ w_t
        w_t, b_f32 = w_eff, b_eff
        n_kernel = 1
    else:
        n_kernel = n_apply

    # Store weight and activations in the MXU input dtype (bf16 by default):
    # halves their HBM traffic and VMEM residency; accumulation stays f32.
    w_in = w_t.astype(compute_dtype)
    x_in = x if x.dtype == compute_dtype else x.astype(compute_dtype)
    b_in = b_f32.reshape(1, N) if has_bias else None

    x_itemsize = jnp.dtype(compute_dtype).itemsize
    w_bytes = x_itemsize * N * N
    vmem_budget = _vmem_budget_bytes()

    tm = _choose_tm(M, N, x_itemsize, w_bytes, vmem_budget)
    num_blocks = M // tm
    assert num_blocks * tm == M

    kernel = functools.partial(
        _matmult_kernel,
        n_apply=n_kernel,
        has_bias=has_bias,
        compute_dtype=compute_dtype,
    )

    # VMEM: double-buffered x tile + single-buffered resident W/bias + temps.
    x_tile_bytes = x_itemsize * tm * N
    est = 2 * x_tile_bytes + w_bytes + 4 * N + 12 * tm * N
    vmem_limit = int(min(vmem_budget, max(8 * 1024 * 1024, 2 * est)))

    cost = pl.CostEstimate(
        flops=2 * M * N * N * n_kernel,
        transcendentals=0,
        bytes_accessed=x_itemsize * M * N + w_bytes + 4 * N + 4 * num_blocks,
    )

    def _run(single_buffer_resident):
        resident_kw = ({"pipeline_mode": pl.Buffered(1)}
                       if single_buffer_resident else {})
        in_specs = [
            # x: tiled over M, double-buffered by the pipeline.
            pl.BlockSpec((tm, N), lambda i: (i, 0)),
            # W: same block every step -> VMEM-resident; single-buffer it so it
            # pays 1x (not 2x) its footprint (critical on v7x's 64 MiB VMEM).
            pl.BlockSpec((N, N), lambda i: (0, 0), **resident_kw),
        ]
        args = [x_in, w_in]
        if has_bias:
            in_specs.append(pl.BlockSpec((1, N), lambda i: (0, 0), **resident_kw))
            args.append(b_in)
        return pl.pallas_call(
            kernel,
            grid=(num_blocks,),
            in_specs=in_specs,
            out_specs=pl.BlockSpec(
                (1, 1), lambda i: (i, 0), memory_space=pltpu.MemorySpace.SMEM),
            out_shape=jax.ShapeDtypeStruct((num_blocks, 1), jnp.float32),
            compiler_params=pltpu.CompilerParams(
                dimension_semantics=("parallel",),  # M-tiles independent (2 TCs on v7x)
                vmem_limit_bytes=vmem_limit,
            ),
            cost_estimate=cost,
        )(*args)

    try:
        partials = _run(True)
    except Exception:
        # TODO(synk): drop this fallback once pipeline_mode=pl.Buffered(1) is
        # guaranteed by the minimum supported jax version.
        partials = _run(False)

    return jnp.sum(partials) / (M * N)


def _reference_forward(x, weight, bias, *, loop_count, is_add_bias):
    n_apply = max(1, int(loop_count))
    out = x.astype(jnp.float32)
    w = weight.astype(jnp.float32)
    for _ in range(n_apply):
        out = jnp.dot(out, w.T, preferred_element_type=jnp.float32)
        if is_add_bias and bias is not None:
            out = out + bias.astype(jnp.float32)
    return jnp.mean(out)


if __name__ == "__main__":
    # Small shapes consistent with the module: n = hidden = 32, batch = 8 rows.
    n = 32
    batch = 8
    loop_count = 3

    key = jax.random.PRNGKey(0)
    kx, kw, kb = jax.random.split(key, 3)

    x = jax.random.normal(kx, (batch, n), dtype=jnp.float32)
    weight = jax.random.normal(kw, (n, n), dtype=jnp.float32) * (n ** -0.5)
    bias = jax.random.normal(kb, (n,), dtype=jnp.float32) * 0.1

    ref = _reference_forward(x, weight, bias, loop_count=loop_count,
                             is_add_bias=True)

    # 1) f32 compute path: validates tiling / partial sums / bias / orientation.
    out_f32 = jax.block_until_ready(
        matmult_forward(x, weight, bias, loop_count=loop_count,
                        is_add_bias=True, compute_dtype=jnp.float32))
    assert jnp.allclose(out_f32, ref, rtol=1e-2, atol=2e-3), (out_f32, ref)

    # 2) Default bf16-MXU path (production): repeated matmuls compound bf16
    #    input rounding, so the tolerance is loosened accordingly.
    out_bf16 = jax.block_until_ready(
        matmult_forward(x, weight, bias, loop_count=loop_count,
                        is_add_bias=True))
    assert jnp.allclose(out_bf16, ref, rtol=5e-2, atol=5e-2), (out_bf16, ref)

    # 3) Bias-free specialization (no bias ref, no add in the kernel).
    ref_nb = _reference_forward(x, weight, None, loop_count=loop_count,
                                is_add_bias=False)
    out_nb = jax.block_until_ready(
        matmult_forward(x, weight, None, loop_count=loop_count,
                        is_add_bias=False, compute_dtype=jnp.float32))
    assert jnp.allclose(out_nb, ref_nb, rtol=1e-2, atol=2e-3), (out_nb, ref_nb)

    # 4) Collapsed affine chain (small-N / large-loop_count fast path):
    #    one matmul in-kernel against W_eff / b_eff folded in f32.
    out_col = jax.block_until_ready(
        matmult_forward(x, weight, bias, loop_count=loop_count,
                        is_add_bias=True, compute_dtype=jnp.float32,
                        collapse_chain=True))
    assert jnp.allclose(out_col, ref, rtol=1e-2, atol=2e-3), (out_col, ref)

    print("KERNEL_OK")
</pallas_src>

<mosaic_0001>
module attributes {stable_mosaic.version = 11 : i64} {
  func.func @_matmult_kernel(%arg0: i32, %arg1: memref<8x32xf32, #tpu.memory_space<vmem>>, %arg2: memref<32x32xf32, #tpu.memory_space<vmem>>, %arg3: memref<1x32xf32, #tpu.memory_space<vmem>>, %arg4: memref<1x1xf32, #tpu.memory_space<smem>>) attributes {dimension_semantics = [#tpu.dimension_semantics<parallel>], iteration_bounds = array<i64: 1>, scalar_prefetch = 0 : i64, scratch_operands = 0 : i64, tpu.core_type = #tpu.core_type<tc>, window_params = [{transform_indices = @transform_0, window_bounds = array<i64: 8, 32>}, {pipeline_mode = #tpu.pipeline_mode<synchronous>, transform_indices = @transform_1, window_bounds = array<i64: 32, 32>}, {pipeline_mode = #tpu.pipeline_mode<synchronous>, transform_indices = @transform_2, window_bounds = array<i64: 1, 32>}, {transform_indices = @transform_3, window_bounds = array<i64: 1, 1>}]} {
    %c0 = arith.constant 0 : index
    %c0_0 = arith.constant 0 : index
    %0 = vector.load %arg2[%c0, %c0_0] : memref<32x32xf32, #tpu.memory_space<vmem>>, vector<32x32xf32>
    %c0_1 = arith.constant 0 : index
    %c0_2 = arith.constant 0 : index
    %1 = vector.load %arg3[%c0_1, %c0_2] : memref<1x32xf32, #tpu.memory_space<vmem>>, vector<1x32xf32>
    %c0_3 = arith.constant 0 : index
    %c0_4 = arith.constant 0 : index
    %2 = vector.load %arg1[%c0_3, %c0_4] : memref<8x32xf32, #tpu.memory_space<vmem>>, vector<8x32xf32>
    %cst = arith.constant dense<0.000000e+00> : vector<8x32xf32>
    %3 = tpu.matmul %2, %0, %cst {dimension_numbers = #tpu.dot_dimension_numbers<[1], [0], [0], [1], [0, 0, 1, 1], [], []>} : vector<8x32xf32>, vector<32x32xf32>, vector<8x32xf32> -> vector<8x32xf32>
    %4 = vector.broadcast %1 : vector<1x32xf32> to vector<8x32xf32>
    %5 = arith.addf %3, %4 : vector<8x32xf32>
    %cst_5 = arith.constant dense<0.000000e+00> : vector<8x32xf32>
    %6 = tpu.matmul %5, %0, %cst_5 {dimension_numbers = #tpu.dot_dimension_numbers<[1], [0], [0], [1], [0, 0, 1, 1], [], []>} : vector<8x32xf32>, vector<32x32xf32>, vector<8x32xf32> -> vector<8x32xf32>
    %7 = vector.broadcast %1 : vector<1x32xf32> to vector<8x32xf32>
    %8 = arith.addf %6, %7 : vector<8x32xf32>
    %cst_6 = arith.constant dense<0.000000e+00> : vector<8x32xf32>
    %9 = tpu.matmul %8, %0, %cst_6 {dimension_numbers = #tpu.dot_dimension_numbers<[1], [0], [0], [1], [0, 0, 1, 1], [], []>} : vector<8x32xf32>, vector<32x32xf32>, vector<8x32xf32> -> vector<8x32xf32>
    %10 = vector.broadcast %1 : vector<1x32xf32> to vector<8x32xf32>
    %11 = arith.addf %9, %10 : vector<8x32xf32>
    %12 = vector.shape_cast %11 : vector<8x32xf32> to vector<1x8x32xf32>
    %cst_7 = arith.constant dense<0.000000e+00> : vector<1xf32>
    %13 = vector.multi_reduction <add>, %12, %cst_7 [1, 2] : vector<1x8x32xf32> to vector<1xf32>
    %14 = vector.shape_cast %13 : vector<1xf32> to vector<1x1x1xf32>
    %15 = vector.extract %14[0, 0, 0] : f32 from vector<1x1x1xf32>
    %c0_8 = arith.constant 0 : index
    %c0_9 = arith.constant 0 : index
    %16 = memref.load %arg4[%c0_8, %c0_9] : memref<1x1xf32, #tpu.memory_space<smem>>
    memref.store %15, %arg4[%c0_8, %c0_9] : memref<1x1xf32, #tpu.memory_space<smem>>
    return
  }
  func.func @transform_0(%arg0: i32) -> (i32, i32) {
    %c0_i32 = arith.constant 0 : i32
    %c0_i32_0 = arith.constant 0 : i32
    return %arg0, %c0_i32 : i32, i32
  }
  func.func @transform_1(%arg0: i32) -> (i32, i32) {
    %c0_i32 = arith.constant 0 : i32
    %c0_i32_0 = arith.constant 0 : i32
    %c0_i32_1 = arith.constant 0 : i32
    return %c0_i32, %c0_i32_0 : i32, i32
  }
  func.func @transform_2(%arg0: i32) -> (i32, i32) {
    %c0_i32 = arith.constant 0 : i32
    %c0_i32_0 = arith.constant 0 : i32
    %c0_i32_1 = arith.constant 0 : i32
    return %c0_i32, %c0_i32_0 : i32, i32
  }
  func.func @transform_3(%arg0: i32) -> (i32, i32) {
    %c0_i32 = arith.constant 0 : i32
    %c0_i32_0 = arith.constant 0 : i32
    return %arg0, %c0_i32 : i32, i32
  }
}

module attributes {stable_mosaic.version = 11 : i64} {
  func.func @_matmult_kernel(%arg0: i32, %arg1: memref<8x32xf32, #tpu.memory_space<vmem>>, %arg2: memref<32x32xf32, #tpu.memory_space<vmem>>, %arg3: memref<1x32xf32, #tpu.memory_space<vmem>>, %arg4: memref<1x1xf32, #tpu.memory_space<smem>>) attributes {dimension_semantics = [#tpu.dimension_semantics<parallel>], iteration_bounds = array<i64: 1>, scalar_prefetch = 0 : i64, scratch_operands = 0 : i64, tpu.core_type = #tpu.core_type<tc>, window_params = [{transform_indices = @transform_0, window_bounds = array<i64: 8, 32>}, {pipeline_mode = #tpu.pipeline_mode<synchronous>, transform_indices = @transform_1, window_bounds = array<i64: 32, 32>}, {pipeline_mode = #tpu.pipeline_mode<synchronous>, transform_indices = @transform_2, window_bounds = array<i64: 1, 32>}, {transform_indices = @transform_3, window_bounds = array<i64: 1, 1>}]} {
    %c0 = arith.constant 0 : index
    %c0_0 = arith.constant 0 : index
    %0 = vector.load %arg2[%c0, %c0_0] : memref<32x32xf32, #tpu.memory_space<vmem>>, vector<32x32xf32>
    %c0_1 = arith.constant 0 : index
    %c0_2 = arith.constant 0 : index
    %1 = vector.load %arg3[%c0_1, %c0_2] : memref<1x32xf32, #tpu.memory_space<vmem>>, vector<1x32xf32>
    %c0_3 = arith.constant 0 : index
    %c0_4 = arith.constant 0 : index
    %2 = vector.load %arg1[%c0_3, %c0_4] : memref<8x32xf32, #tpu.memory_space<vmem>>, vector<8x32xf32>
    %cst = arith.constant dense<0.000000e+00> : vector<8x32xf32>
    %3 = tpu.matmul %2, %0, %cst {dimension_numbers = #tpu.dot_dimension_numbers<[1], [0], [0], [1], [0, 0, 1, 1], [], []>} : vector<8x32xf32>, vector<32x32xf32>, vector<8x32xf32> -> vector<8x32xf32>
    %4 = vector.broadcast %1 : vector<1x32xf32> to vector<8x32xf32>
    %5 = arith.addf %3, %4 : vector<8x32xf32>
    %cst_5 = arith.constant dense<0.000000e+00> : vector<8x32xf32>
    %6 = tpu.matmul %5, %0, %cst_5 {dimension_numbers = #tpu.dot_dimension_numbers<[1], [0], [0], [1], [0, 0, 1, 1], [], []>} : vector<8x32xf32>, vector<32x32xf32>, vector<8x32xf32> -> vector<8x32xf32>
    %7 = vector.broadcast %1 : vector<1x32xf32> to vector<8x32xf32>
    %8 = arith.addf %6, %7 : vector<8x32xf32>
    %cst_6 = arith.constant dense<0.000000e+00> : vector<8x32xf32>
    %9 = tpu.matmul %8, %0, %cst_6 {dimension_numbers = #tpu.dot_dimension_numbers<[1], [0], [0], [1], [0, 0, 1, 1], [], []>} : vector<8x32xf32>, vector<32x32xf32>, vector<8x32xf32> -> vector<8x32xf32>
    %10 = vector.broadcast %1 : vector<1x32xf32> to vector<8x32xf32>
    %11 = arith.addf %9, %10 : vector<8x32xf32>
    %12 = vector.shape_cast %11 : vector<8x32xf32> to vector<1x8x32xf32>
    %cst_7 = arith.constant dense<0.000000e+00> : vector<1xf32>
    %13 = vector.multi_reduction <add>, %12, %cst_7 [1, 2] : vector<1x8x32xf32> to vector<1xf32>
    %14 = vector.shape_cast %13 : vector<1xf32> to vector<1x1x1xf32>
    %15 = vector.extract %14[0, 0, 0] : f32 from vector<1x1x1xf32>
    %c0_8 = arith.constant 0 : index
    %c0_9 = arith.constant 0 : index
    %16 = memref.load %arg4[%c0_8, %c0_9] : memref<1x1xf32, #tpu.memory_space<smem>>
    memref.store %15, %arg4[%c0_8, %c0_9] : memref<1x1xf32, #tpu.memory_space<smem>>
    return
  }
  func.func @transform_0(%arg0: i32) -> (i32, i32) {
    %c0_i32 = arith.constant 0 : i32
    %c0_i32_0 = arith.constant 0 : i32
    return %arg0, %c0_i32 : i32, i32
  }
  func.func @transform_1(%arg0: i32) -> (i32, i32) {
    %c0_i32 = arith.constant 0 : i32
    %c0_i32_0 = arith.constant 0 : i32
    %c0_i32_1 = arith.constant 0 : i32
    return %c0_i32, %c0_i32_0 : i32, i32
  }
  func.func @transform_2(%arg0: i32) -> (i32, i32) {
    %c0_i32 = arith.constant 0 : i32
    %c0_i32_0 = arith.constant 0 : i32
    %c0_i32_1 = arith.constant 0 : i32
    return %c0_i32, %c0_i32_0 : i32, i32
  }
  func.func @transform_3(%arg0: i32) -> (i32, i32) {
    %c0_i32 = arith.constant 0 : i32
    %c0_i32_0 = arith.constant 0 : i32
    return %arg0, %c0_i32 : i32, i32
  }
}

</mosaic_0001>

<bundles_post_ra>
// kernel: tpu_custom_call.1
= control target key start
LH: loop header
LB: loop body
LE: loop exit
PB: predicated region body
PF: predicated region fallthrough
CT: control target
= control target key end

     0   :  { %8 = vsyncpa [#allocation3], 0  ;;  %s271_s0 = inlined_call_operand.hbm [shape: f32[8,32], index: 0, kind: input, shape index: {}]   ;;  %s272_s1 = inlined_call_operand.hbm [shape: f32[32,32], index: 1, kind: input, shape index: {}]   ;;  %s273_s2 = inlined_call_operand.vmem [shape: f32[1,32], index: 2, kind: input, shape index: {}]   ;;  %s274_s3 = inlined_call_operand.hbm [shape: f32[1,1], index: 3, kind: output, shape index: {}]  }
   0x1   :  { %9 = vsyncpa [#allocation6], 0 }
   0x2   :  { %10 = vsyncpa [#allocation4], 0  ;;  %s16_s14 = sshll.u32 %s271_s0, 4  ;;  %s230_s15 = smov [#allocation2]   ;;  %s17_s14 = int_to_ptr.hbm [resolvable:$true] %s16_s14 }
   0x3   :  { %s18_s16 = sshll.u32 %s230_s15, 4  ;;  %s26_s19 = sshll.u32 %s272_s1, 4  ;;  %s19_s16 = int_to_ptr.vmem [resolvable:$true] %s18_s16  ;;  %s27_s19 = int_to_ptr.hbm [resolvable:$true] %s26_s19 }
   0x4   :  { %21 = dma.hbm_to_vmem [thread:$0]  %s17_s14, 128, %s19_s16, [#allocation3]  }
   0x5   :  { %s231_s20 = smov [#allocation5]   ;;  %s232_s22 = smov 128  }
   0x6   :  { %s28_s21 = sshll.u32 %s231_s20, 4  ;;  %s233_s23 = smov 8   ;;  %s29_s21 = int_to_ptr.vmem [resolvable:$true] %s28_s21 }
   0x7   :  { %34 = dma.hbm_to_vmem [thread:$0]  %s27_s19, 512, %s29_s21, [#allocation6], %s232_s22, %s232_s22, %s233_s23  }
   0x8   :  { %224 = dma.done.wait [#allocation3], 128  }
   0x9   :  { %225 = vsyncadd [#allocation3], 4294967168 }
   0xa   :  { %226 = dma.done.wait [#allocation6], 512  }
   0xb   :  { %227 = vsyncadd [#allocation6], 4294966784  ;;  %v48_v0 = vld [vmem:[#allocation5 + $0x18] sm:$0xff]  ;;  %v47_v1 = vld [vmem:[#allocation5 + $0x10] sm:$0xff]  ;;  %vm54_vm0 = vcmask 261120   ;;  %s141_s25 = sshll.u32 %s274_s3, 4  ;;  %s142_s25 = int_to_ptr.hbm [resolvable:$true] %s141_s25 }
   0xc   :  { %70 = vmatpush.msra.mxu0 %v48_v0  ;;  %93 = vmatpush.msra.mxu1 %v48_v0  ;;  %v46_v2 = vld [vmem:[#allocation5 + $0x8] sm:$0xff]  ;;  %v45_v3 = vld [vmem:[#allocation5] sm:$0xff]  ;;  %v50_v4 = vld [vmem:[#allocation2] sm:$0xff]  ;;  %s234_s27 = smov [#allocation7]  }
   0xd   :  { %116 = vmatpush.msra.mxu2 %v48_v0  ;;  %v163_v5 = vld [vmem:[%s273_s2] ss:$0 sm:$0xff] }
   0xe   :  { %71 = vmatpush.msra.mxu0 %v47_v1  ;;  %94 = vmatpush.msra.mxu1 %v47_v1 }
   0xf   :  { %117 = vmatpush.msra.mxu2 %v47_v1 }
  0x10   :  { %72 = vmatpush.msra.mxu0 %v46_v2  ;;  %95 = vmatpush.msra.mxu1 %v46_v2 }
  0x11   :  { %118 = vmatpush.msra.mxu2 %v46_v2 }
  0x12   :  { %73 = vmatpush.msra.mxu0 %v45_v3  ;;  %96 = vmatpush.msra.mxu1 %v45_v3 }
  0x13   :  { %153 = vmatmul.msk.f32.vlgmr.msra.gmra.mxu0 %vm54_vm0, %v50_v4  ;;  %119 = vmatpush.msra.mxu2 %v45_v3 }
  0x90   :  { %v75_v6 = vpop.f32.mrf.mxu0 }
  0x91   :  { %v76_v7 = vadd.f32 %v163_v5, %v75_v6 }
  0x93   :  { %154 = vmatmul.msk.f32.vlgmr.msra.gmra.mxu1 %vm54_vm0, %v76_v7 }
 0x110   :  { %v98_v8 = vpop.f32.mrf.mxu1 }
 0x111   :  { %v99_v9 = vadd.f32 %v163_v5, %v98_v8 }
 0x113   :  { %155 = vmatmul.msk.f32.vlgmr.msra.gmra.mxu2 %vm54_vm0, %v99_v9 }
 0x196   :  { %v121_v10 = vpop.f32.mrf.mxu2 }
 0x197   :  { %v122_v11 = vadd.f32 %v163_v5, %v121_v10 }
 0x199   :  { %v124_v12 = vsel %vm54_vm0, %v122_v11, 0.0 }
 0x19a   :  { %125 = vadd.xlane.f32.xlu0 %v124_v12 }
 0x20d   :  { %v126_v13 = vpop.xlane.xlu0 %125 }
 0x20e   :  { %v127_v14 = vrot.slane %v126_v13, 4 }
 0x210   :  { %v128_v15 = vadd.f32 %v127_v14, %v126_v13 }
 0x212   :  { %v129_v16 = vrot.slane %v128_v15, 2 }
 0x214   :  { %v130_v17 = vadd.f32 %v129_v16, %v128_v15 }
 0x216   :  { %v131_v18 = vrot.slane %v130_v17, 1 }
 0x218   :  { %v132_v19 = vadd.f32 %v131_v18, %v130_v17 }
 0x21a   :  { %156 = vpush %v132_v19 }
 0x24b   :  { %s157_s26 = spop %156 }
 0x24c   :  { %135 = sst [smem:[#allocation7]] %s157_s26 }
 0x24d   :  { %144 = dma.smem_to_hbm %s234_s27, 16, %s142_s25, [#allocation4]  }
 0x24e   :  { %228 = dma.done.wait [#allocation4], 16  }
 0x24f   :  { %229 = vsyncadd [#allocation4], 4294967280 }
 0x250   :  { %149 = sfence }
 0x251   :  { %150 = vsyncpa [#allocation3], 1 }
 0x252   :  { %151 = vsyncpa [#allocation6], 1 }
 0x253   :  { %152 = vsyncpa [#allocation4], 1 }

// kernel: tpu_custom_call.1
= control target key start
LH: loop header
LB: loop body
LE: loop exit
PB: predicated region body
PF: predicated region fallthrough
CT: control target
= control target key end

     0   :  { %8 = vsyncpa [#allocation3], 0  ;;  %s271_s0 = inlined_call_operand.hbm [shape: f32[8,32], index: 0, kind: input, shape index: {}]   ;;  %s272_s1 = inlined_call_operand.hbm [shape: f32[32,32], index: 1, kind: input, shape index: {}]   ;;  %s273_s2 = inlined_call_operand.vmem [shape: f32[1,32], index: 2, kind: input, shape index: {}]   ;;  %s274_s3 = inlined_call_operand.hbm [shape: f32[1,1], index: 3, kind: output, shape index: {}]  }
   0x1   :  { %9 = vsyncpa [#allocation6], 0 }
   0x2   :  { %10 = vsyncpa [#allocation4], 0  ;;  %s16_s14 = sshll.u32 %s271_s0, 4  ;;  %s230_s15 = smov [#allocation2]   ;;  %s17_s14 = int_to_ptr.hbm [resolvable:$true] %s16_s14 }
   0x3   :  { %s18_s16 = sshll.u32 %s230_s15, 4  ;;  %s26_s19 = sshll.u32 %s272_s1, 4  ;;  %s19_s16 = int_to_ptr.vmem [resolvable:$true] %s18_s16  ;;  %s27_s19 = int_to_ptr.hbm [resolvable:$true] %s26_s19 }
   0x4   :  { %21 = dma.hbm_to_vmem [thread:$0]  %s17_s14, 128, %s19_s16, [#allocation3]  }
   0x5   :  { %s231_s20 = smov [#allocation5]   ;;  %s232_s22 = smov 128  }
   0x6   :  { %s28_s21 = sshll.u32 %s231_s20, 4  ;;  %s233_s23 = smov 8   ;;  %s29_s21 = int_to_ptr.vmem [resolvable:$true] %s28_s21 }
   0x7   :  { %34 = dma.hbm_to_vmem [thread:$0]  %s27_s19, 512, %s29_s21, [#allocation6], %s232_s22, %s232_s22, %s233_s23  }
   0x8   :  { %224 = dma.done.wait [#allocation3], 128  }
   0x9   :  { %225 = vsyncadd [#allocation3], 4294967168 }
   0xa   :  { %226 = dma.done.wait [#allocation6], 512  }
   0xb   :  { %227 = vsyncadd [#allocation6], 4294966784  ;;  %v48_v0 = vld [vmem:[#allocation5 + $0x18] sm:$0xff]  ;;  %v47_v1 = vld [vmem:[#allocation5 + $0x10] sm:$0xff]  ;;  %vm54_vm0 = vcmask 261120   ;;  %s141_s25 = sshll.u32 %s274_s3, 4  ;;  %s142_s25 = int_to_ptr.hbm [resolvable:$true] %s141_s25 }
   0xc   :  { %70 = vmatpush.msra.mxu0 %v48_v0  ;;  %93 = vmatpush.msra.mxu1 %v48_v0  ;;  %v46_v2 = vld [vmem:[#allocation5 + $0x8] sm:$0xff]  ;;  %v45_v3 = vld [vmem:[#allocation5] sm:$0xff]  ;;  %v50_v4 = vld [vmem:[#allocation2] sm:$0xff]  ;;  %s234_s27 = smov [#allocation7]  }
   0xd   :  { %116 = vmatpush.msra.mxu2 %v48_v0  ;;  %v163_v5 = vld [vmem:[%s273_s2] ss:$0 sm:$0xff] }
   0xe   :  { %71 = vmatpush.msra.mxu0 %v47_v1  ;;  %94 = vmatpush.msra.mxu1 %v47_v1 }
   0xf   :  { %117 = vmatpush.msra.mxu2 %v47_v1 }
  0x10   :  { %72 = vmatpush.msra.mxu0 %v46_v2  ;;  %95 = vmatpush.msra.mxu1 %v46_v2 }
  0x11   :  { %118 = vmatpush.msra.mxu2 %v46_v2 }
  0x12   :  { %73 = vmatpush.msra.mxu0 %v45_v3  ;;  %96 = vmatpush.msra.mxu1 %v45_v3 }
  0x13   :  { %153 = vmatmul.msk.f32.vlgmr.msra.gmra.mxu0 %vm54_vm0, %v50_v4  ;;  %119 = vmatpush.msra.mxu2 %v45_v3 }
  0x90   :  { %v75_v6 = vpop.f32.mrf.mxu0 }
  0x91   :  { %v76_v7 = vadd.f32 %v163_v5, %v75_v6 }
  0x93   :  { %154 = vmatmul.msk.f32.vlgmr.msra.gmra.mxu1 %vm54_vm0, %v76_v7 }
 0x110   :  { %v98_v8 = vpop.f32.mrf.mxu1 }
 0x111   :  { %v99_v9 = vadd.f32 %v163_v5, %v98_v8 }
 0x113   :  { %155 = vmatmul.msk.f32.vlgmr.msra.gmra.mxu2 %vm54_vm0, %v99_v9 }
 0x196   :  { %v121_v10 = vpop.f32.mrf.mxu2 }
 0x197   :  { %v122_v11 = vadd.f32 %v163_v5, %v121_v10 }
 0x199   :  { %v124_v12 = vsel %vm54_vm0, %v122_v11, 0.0 }
 0x19a   :  { %125 = vadd.xlane.f32.xlu0 %v124_v12 }
 0x20d   :  { %v126_v13 = vpop.xlane.xlu0 %125 }
 0x20e   :  { %v127_v14 = vrot.slane %v126_v13, 4 }
 0x210   :  { %v128_v15 = vadd.f32 %v127_v14, %v126_v13 }
 0x212   :  { %v129_v16 = vrot.slane %v128_v15, 2 }
 0x214   :  { %v130_v17 = vadd.f32 %v129_v16, %v128_v15 }
 0x216   :  { %v131_v18 = vrot.slane %v130_v17, 1 }
 0x218   :  { %v132_v19 = vadd.f32 %v131_v18, %v130_v17 }
 0x21a   :  { %156 = vpush %v132_v19 }
 0x24b   :  { %s157_s26 = spop %156 }
 0x24c   :  { %135 = sst [smem:[#allocation7]] %s157_s26 }
 0x24d   :  { %144 = dma.smem_to_hbm %s234_s27, 16, %s142_s25, [#allocation4]  }
 0x24e   :  { %228 = dma.done.wait [#allocation4], 16  }
 0x24f   :  { %229 = vsyncadd [#allocation4], 4294967280 }
 0x250   :  { %149 = sfence }
 0x251   :  { %150 = vsyncpa [#allocation3], 1 }
 0x252   :  { %151 = vsyncpa [#allocation6], 1 }
 0x253   :  { %152 = vsyncpa [#allocation4], 1 }

</bundles_post_ra>
